<compile_context>
chip_gen: v6e
topology: v6e:2x2x1
jax: 0.10.0
libtpu: 0.0.40
codegen_flags: <defaults>
</compile_context>

<pallas_src>
import functools

import jax
import jax.numpy as jnp
from jax.experimental import pallas as pl
from jax.experimental.pallas import tpu as pltpu

EPS = 1e-5
VMEM_LIMIT = 48 * 1024 * 1024  # safe on v7x (64 MiB physical); generous on v5e/v6e


def _round_up(v, m):
    return ((v + m - 1) // m) * m


def _pad2(a, rows, cols):
    r, c = a.shape
    if r == rows and c == cols:
        return a
    return jnp.pad(a, ((0, rows - r), (0, cols - c)))


# ---------------------------------------------------------------------------
# Pass 1: per-feature batch statistics (sum, sum of squares).
#   grid = (F_tiles, N_tiles); batch is the innermost ("arbitrary") reduction
#   axis.  Accumulate into an (8, tk) f32 scratch so per-step work is pure VPU
#   adds; the cross-sublane (XLU) 8 -> 1 reduction runs once in finalize.
# ---------------------------------------------------------------------------
def _batch_stats_kernel(x_ref, sum_ref, sq_ref, acc_s, acc_q):
    i = pl.program_id(1)

    @pl.when(i == 0)
    def _init():
        acc_s[...] = jnp.zeros_like(acc_s)
        acc_q[...] = jnp.zeros_like(acc_q)

    tm, tk = x_ref.shape
    x = x_ref[...].astype(jnp.float32).reshape(tm // 8, 8, tk)
    acc_s[...] += jnp.sum(x, axis=0)
    acc_q[...] += jnp.sum(x * x, axis=0)

    @pl.when(i == pl.num_programs(1) - 1)
    def _finalize():
        sum_ref[...] = jnp.sum(acc_s[...], axis=0, keepdims=True)
        sq_ref[...] = jnp.sum(acc_q[...], axis=0, keepdims=True)


# ---------------------------------------------------------------------------
# Pass 2: plain tiled matmul + bias (BN already folded into W / bias).
#   grid = (M_tiles, O_tiles, K_tiles); K (features) is the innermost
#   "arbitrary" reduction axis, f32 VMEM accumulator, bias added at last K.
# ---------------------------------------------------------------------------
def _matmul_bias_kernel(x_ref, w_ref, b_ref, o_ref, acc_ref):
    k = pl.program_id(2)

    @pl.when(k == 0)
    def _init():
        acc_ref[...] = jnp.zeros_like(acc_ref)

    acc_ref[...] += jnp.dot(
        x_ref[...], w_ref[...], preferred_element_type=jnp.float32)

    @pl.when(k == pl.num_programs(2) - 1)
    def _finalize():
        o_ref[...] = (acc_ref[...] + b_ref[...]).astype(o_ref.dtype)


# ---------------------------------------------------------------------------
# Wrapper
# ---------------------------------------------------------------------------
@functools.partial(jax.jit, static_argnames=("mxu_dtype",))
def batchnorm_linear(x, gamma, beta, weight_t, bias, *, mxu_dtype=jnp.bfloat16):
    """Training-mode BatchNorm1d followed by Linear.

    x:        (N, F)  activations
    gamma:    (F,)    BatchNorm weight
    beta:     (F,)    BatchNorm bias
    weight_t: (F, O)  Linear weight, PRE-transposed once at init
    bias:     (O,)    Linear bias
    """
    N, F = x.shape
    O = weight_t.shape[1]

    # --- tile selection: lane-dense (last dims multiples of 128), big tiles ---
    tm = min(512, _round_up(N, 8))
    tk = min(1024, _round_up(F, 128))
    tn = min(1024, _round_up(O, 128))
    N_p = _round_up(N, tm)
    F_p = _round_up(F, tk)
    # v7x has 2 TensorCores: if the batch collapses to one M tile, keep the
    # output-column ("parallel") axis at extent >= 2 when possible.
    if N_p // tm == 1:
        while tn >= 256 and tn % 256 == 0 and _round_up(O, tn) // tn < 2:
            tn //= 2
    O_p = _round_up(O, tn)

    # TODO(synk): for badly unaligned N / F the jnp.pad below copies x once in
    # HBM; a masked-edge-tile variant (pl.cdiv grid) would avoid that pass.
    x_p = _pad2(x, N_p, F_p)

    # ---------------- Pass 1: per-feature batch statistics -------------------
    sums, sqs = pl.pallas_call(
        _batch_stats_kernel,
        out_shape=(jax.ShapeDtypeStruct((1, F_p), jnp.float32),
                   jax.ShapeDtypeStruct((1, F_p), jnp.float32)),
        grid_spec=pltpu.PrefetchScalarGridSpec(
            num_scalar_prefetch=0,
            grid=(F_p // tk, N_p // tm),              # batch (reduction) last
            in_specs=[pl.BlockSpec((tm, tk), lambda f, i: (i, f))],
            out_specs=(pl.BlockSpec((1, tk), lambda f, i: (0, f)),
                       pl.BlockSpec((1, tk), lambda f, i: (0, f))),
            scratch_shapes=[pltpu.VMEM((8, tk), jnp.float32),
                            pltpu.VMEM((8, tk), jnp.float32)]),
        compiler_params=pltpu.CompilerParams(
            dimension_semantics=("parallel", "arbitrary"),
            vmem_limit_bytes=VMEM_LIMIT),
        cost_estimate=pl.CostEstimate(
            flops=3 * N_p * F_p, transcendentals=0,
            bytes_accessed=x_p.size * x_p.dtype.itemsize + 8 * F_p),
    )(x_p)

    # ---------------- Fold BN into the Linear parameters ---------------------
    inv_n = 1.0 / N                                   # true batch size
    mean = sums[:, :F] * inv_n                        # (1, F)
    var = jnp.maximum(sqs[:, :F] * inv_n - mean * mean, 0.0)  # biased (training)
    # TODO(synk): E[x^2]-E[x]^2 can lose precision for inputs with a large mean
    # relative to their std; a shifted / Welford two-pass variance is safer.
    scale = gamma.reshape(1, F) * jax.lax.rsqrt(var + EPS)    # (1, F)
    shift = beta.reshape(1, F) - mean * scale                 # (1, F)

    # One F x O scale + one (1,F)@(F,O) GEMV here instead of a VPU affine on
    # every re-read x tile inside the matmul loop.
    w_eff = (weight_t * scale.reshape(F, 1)).astype(mxu_dtype)   # (F, O)
    b_eff = bias.reshape(1, O) + shift @ weight_t                # (1, O) f32

    w_p = _pad2(w_eff, F_p, O_p)
    b_p = _pad2(b_eff, 1, O_p)
    x_mxu = x_p.astype(mxu_dtype)        # cast once; pass 2 re-reads x O_p/tn times

    # ---------------- Pass 2: tiled matmul + bias -----------------------------
    flops = 2 * N_p * F_p * O_p
    bytes_accessed = (x_mxu.size * x_mxu.dtype.itemsize * max(1, O_p // tn)
                      + w_p.size * w_p.dtype.itemsize * max(1, N_p // tm)
                      + N_p * O_p * x.dtype.itemsize)

    out_p = pl.pallas_call(
        _matmul_bias_kernel,
        out_shape=jax.ShapeDtypeStruct((N_p, O_p), x.dtype),
        grid_spec=pltpu.PrefetchScalarGridSpec(
            num_scalar_prefetch=0,
            grid=(N_p // tm, O_p // tn, F_p // tk),   # K (reduction) last
            in_specs=[
                pl.BlockSpec((tm, tk), lambda i, j, k: (i, k)),   # x (MXU dtype)
                pl.BlockSpec((tk, tn), lambda i, j, k: (k, j)),   # W_eff (F, O)
                pl.BlockSpec((1, tn), lambda i, j, k: (0, j)),    # bias_eff
            ],
            out_specs=pl.BlockSpec((tm, tn), lambda i, j, k: (i, j)),
            scratch_shapes=[pltpu.VMEM((tm, tn), jnp.float32)]),
        compiler_params=pltpu.CompilerParams(
            dimension_semantics=("parallel", "parallel", "arbitrary"),
            vmem_limit_bytes=VMEM_LIMIT),
        cost_estimate=pl.CostEstimate(
            flops=flops, transcendentals=0, bytes_accessed=bytes_accessed),
    )(x_mxu, w_p, b_p)

    return out_p[:N, :O]


# TODO(synk): running_mean / running_var updates (eval-mode BatchNorm state) are
# not computed; this reproduces the training-mode forward activations only.


def reference(x, gamma, beta, weight, bias):
    mean = jnp.mean(x, axis=0, keepdims=True)
    var = jnp.mean((x - mean) ** 2, axis=0, keepdims=True)
    xn = (x - mean) / jnp.sqrt(var + EPS) * gamma + beta
    return xn @ weight.T + bias


if __name__ == "__main__":
    key = jax.random.PRNGKey(0)
    N, in_features, out_features = 8, 32, 16

    k_x, k_w, k_b = jax.random.split(key, 3)
    x = jax.random.normal(k_x, (N, in_features), dtype=jnp.float32)

    # Parameters (torch-default-style init for BN; uniform for Linear).
    gamma = jnp.ones((in_features,), dtype=jnp.float32)
    beta = jnp.zeros((in_features,), dtype=jnp.float32)
    bound = 1.0 / float(in_features) ** 0.5
    weight = jax.random.uniform(k_w, (out_features, in_features),
                                minval=-bound, maxval=bound, dtype=jnp.float32)
    bias = jax.random.uniform(k_b, (out_features,),
                              minval=-bound, maxval=bound, dtype=jnp.float32)

    # Store the Linear weight pre-transposed (F, O) ONCE, outside the hot path.
    weight_t = weight.T

    ref = reference(x, gamma, beta, weight, bias)

    # f32 MXU path: tight numerical check.
    out_f32 = jax.block_until_ready(
        batchnorm_linear(x, gamma, beta, weight_t, bias, mxu_dtype=jnp.float32))
    assert out_f32.shape == (N, out_features)
    assert jnp.allclose(out_f32, ref, atol=1e-4, rtol=1e-4), "f32 mismatch vs reference"

    # bf16 MXU path (default; fastest on v6e/v7x): looser tolerance.
    out_bf16 = jax.block_until_ready(
        batchnorm_linear(x, gamma, beta, weight_t, bias))
    assert out_bf16.shape == (N, out_features)
    assert jnp.allclose(out_bf16, ref, atol=3e-2, rtol=3e-2), "bf16 mismatch vs reference"

    print("KERNEL_OK")
</pallas_src>

<mosaic_0001>
module attributes {stable_mosaic.version = 11 : i64} {
  func.func @_batch_stats_kernel(%arg0: i32, %arg1: i32, %arg2: memref<8x128xf32, #tpu.memory_space<vmem>>, %arg3: memref<1x128xf32, #tpu.memory_space<vmem>>, %arg4: memref<1x128xf32, #tpu.memory_space<vmem>>, %arg5: memref<8x128xf32, #tpu.memory_space<vmem>>, %arg6: memref<8x128xf32, #tpu.memory_space<vmem>>) attributes {dimension_semantics = [#tpu.dimension_semantics<parallel>, #tpu.dimension_semantics<arbitrary>], iteration_bounds = array<i64: 1, 1>, scalar_prefetch = 0 : i64, scratch_operands = 2 : i64, tpu.core_type = #tpu.core_type<tc>, window_params = [{transform_indices = @transform_0, window_bounds = array<i64: 8, 128>}, {transform_indices = @transform_1, window_bounds = array<i64: 1, 128>}, {transform_indices = @transform_2, window_bounds = array<i64: 1, 128>}]} {
    %c0_i32 = arith.constant 0 : i32
    %0 = arith.cmpi eq, %arg1, %c0_i32 : i32
    %1 = arith.extui %0 : i1 to i32
    %c0_i32_0 = arith.constant 0 : i32
    %2 = arith.cmpi ne, %1, %c0_i32_0 : i32
    scf.if %2 {
      %cst_13 = arith.constant 0.000000e+00 : f32
      %17 = vector.broadcast %cst_13 : f32 to vector<8x128xf32>
      %c0_14 = arith.constant 0 : index
      %c0_15 = arith.constant 0 : index
      %18 = vector.load %arg5[%c0_14, %c0_15] : memref<8x128xf32, #tpu.memory_space<vmem>>, vector<8x128xf32>
      tpu.vector_store %arg5[%c0_14, %c0_15], %17 {strides = array<i32>} : memref<8x128xf32, #tpu.memory_space<vmem>>, vector<8x128xf32>,
      %cst_16 = arith.constant 0.000000e+00 : f32
      %19 = vector.broadcast %cst_16 : f32 to vector<8x128xf32>
      %c0_17 = arith.constant 0 : index
      %c0_18 = arith.constant 0 : index
      %20 = vector.load %arg6[%c0_17, %c0_18] : memref<8x128xf32, #tpu.memory_space<vmem>>, vector<8x128xf32>
      tpu.vector_store %arg6[%c0_17, %c0_18], %19 {strides = array<i32>} : memref<8x128xf32, #tpu.memory_space<vmem>>, vector<8x128xf32>,
    } else {
    }
    %c0 = arith.constant 0 : index
    %c0_1 = arith.constant 0 : index
    %3 = vector.load %arg2[%c0, %c0_1] : memref<8x128xf32, #tpu.memory_space<vmem>>, vector<8x128xf32>
    %4 = vector.shape_cast %3 : vector<8x128xf32> to vector<1x8x128xf32>
    %c0_2 = arith.constant 0 : index
    %c0_3 = arith.constant 0 : index
    %5 = vector.load %arg5[%c0_2, %c0_3] : memref<8x128xf32, #tpu.memory_space<vmem>>, vector<8x128xf32>
    %cst = arith.constant dense<0.000000e+00> : vector<8x128xf32>
    %6 = vector.multi_reduction <add>, %4, %cst [0] : vector<1x8x128xf32> to vector<8x128xf32>
    %7 = arith.addf %5, %6 : vector<8x128xf32>
    %c0_4 = arith.constant 0 : index
    %c0_5 = arith.constant 0 : index
    %8 = vector.load %arg5[%c0_4, %c0_5] : memref<8x128xf32, #tpu.memory_space<vmem>>, vector<8x128xf32>
    tpu.vector_store %arg5[%c0_4, %c0_5], %7 {strides = array<i32>} : memref<8x128xf32, #tpu.memory_space<vmem>>, vector<8x128xf32>,
    %c0_6 = arith.constant 0 : index
    %c0_7 = arith.constant 0 : index
    %9 = vector.load %arg6[%c0_6, %c0_7] : memref<8x128xf32, #tpu.memory_space<vmem>>, vector<8x128xf32>
    %10 = arith.mulf %4, %4 : vector<1x8x128xf32>
    %cst_8 = arith.constant dense<0.000000e+00> : vector<8x128xf32>
    %11 = vector.multi_reduction <add>, %10, %cst_8 [0] : vector<1x8x128xf32> to vector<8x128xf32>
    %12 = arith.addf %9, %11 : vector<8x128xf32>
    %c0_9 = arith.constant 0 : index
    %c0_10 = arith.constant 0 : index
    %13 = vector.load %arg6[%c0_9, %c0_10] : memref<8x128xf32, #tpu.memory_space<vmem>>, vector<8x128xf32>
    tpu.vector_store %arg6[%c0_9, %c0_10], %12 {strides = array<i32>} : memref<8x128xf32, #tpu.memory_space<vmem>>, vector<8x128xf32>,
    %c0_i32_11 = arith.constant 0 : i32
    %14 = arith.cmpi eq, %arg1, %c0_i32_11 : i32
    %15 = arith.extui %14 : i1 to i32
    %c0_i32_12 = arith.constant 0 : i32
    %16 = arith.cmpi ne, %15, %c0_i32_12 : i32
    scf.if %16 {
      %c0_13 = arith.constant 0 : index
      %c0_14 = arith.constant 0 : index
      %17 = vector.load %arg5[%c0_13, %c0_14] : memref<8x128xf32, #tpu.memory_space<vmem>>, vector<8x128xf32>
      %cst_15 = arith.constant dense<0.000000e+00> : vector<128xf32>
      %18 = vector.multi_reduction <add>, %17, %cst_15 [0] : vector<8x128xf32> to vector<128xf32>
      %19 = vector.shape_cast %18 : vector<128xf32> to vector<1x128xf32>
      %c0_16 = arith.constant 0 : index
      %c0_17 = arith.constant 0 : index
      %20 = vector.load %arg3[%c0_16, %c0_17] : memref<1x128xf32, #tpu.memory_space<vmem>>, vector<1x128xf32>
      tpu.vector_store %arg3[%c0_16, %c0_17], %19 {strides = array<i32>} : memref<1x128xf32, #tpu.memory_space<vmem>>, vector<1x128xf32>,
      %c0_18 = arith.constant 0 : index
      %c0_19 = arith.constant 0 : index
      %21 = vector.load %arg6[%c0_18, %c0_19] : memref<8x128xf32, #tpu.memory_space<vmem>>, vector<8x128xf32>
      %cst_20 = arith.constant dense<0.000000e+00> : vector<128xf32>
      %22 = vector.multi_reduction <add>, %21, %cst_20 [0] : vector<8x128xf32> to vector<128xf32>
      %23 = vector.shape_cast %22 : vector<128xf32> to vector<1x128xf32>
      %c0_21 = arith.constant 0 : index
      %c0_22 = arith.constant 0 : index
      %24 = vector.load %arg4[%c0_21, %c0_22] : memref<1x128xf32, #tpu.memory_space<vmem>>, vector<1x128xf32>
      tpu.vector_store %arg4[%c0_21, %c0_22], %23 {strides = array<i32>} : memref<1x128xf32, #tpu.memory_space<vmem>>, vector<1x128xf32>,
    } else {
    }
    return
  }
  func.func @transform_0(%arg0: i32, %arg1: i32) -> (i32, i32) {
    %c0_i32 = arith.constant 0 : i32
    return %arg1, %arg0 : i32, i32
  }
  func.func @transform_1(%arg0: i32, %arg1: i32) -> (i32, i32) {
    %c0_i32 = arith.constant 0 : i32
    %c0_i32_0 = arith.constant 0 : i32
    return %c0_i32, %arg0 : i32, i32
  }
  func.func @transform_2(%arg0: i32, %arg1: i32) -> (i32, i32) {
    %c0_i32 = arith.constant 0 : i32
    %c0_i32_0 = arith.constant 0 : i32
    return %c0_i32, %arg0 : i32, i32
  }
}

module attributes {stable_mosaic.version = 11 : i64} {
  func.func @_matmul_bias_kernel(%arg0: i32, %arg1: i32, %arg2: i32, %arg3: memref<8x128xf32, #tpu.memory_space<vmem>>, %arg4: memref<128x128xf32, #tpu.memory_space<vmem>>, %arg5: memref<1x128xf32, #tpu.memory_space<vmem>>, %arg6: memref<8x128xf32, #tpu.memory_space<vmem>>, %arg7: memref<8x128xf32, #tpu.memory_space<vmem>>) attributes {dimension_semantics = [#tpu.dimension_semantics<parallel>, #tpu.dimension_semantics<parallel>, #tpu.dimension_semantics<arbitrary>], iteration_bounds = array<i64: 1, 1, 1>, scalar_prefetch = 0 : i64, scratch_operands = 1 : i64, tpu.core_type = #tpu.core_type<tc>, window_params = [{transform_indices = @transform_0, window_bounds = array<i64: 8, 128>}, {transform_indices = @transform_1, window_bounds = array<i64: 128, 128>}, {transform_indices = @transform_2, window_bounds = array<i64: 1, 128>}, {transform_indices = @transform_3, window_bounds = array<i64: 8, 128>}]} {
    %c0_i32 = arith.constant 0 : i32
    %0 = arith.cmpi eq, %arg2, %c0_i32 : i32
    %1 = arith.extui %0 : i1 to i32
    %c0_i32_0 = arith.constant 0 : i32
    %2 = arith.cmpi ne, %1, %c0_i32_0 : i32
    scf.if %2 {
      %cst_10 = arith.constant 0.000000e+00 : f32
      %12 = vector.broadcast %cst_10 : f32 to vector<8x128xf32>
      %c0_11 = arith.constant 0 : index
      %c0_12 = arith.constant 0 : index
      %13 = vector.load %arg7[%c0_11, %c0_12] : memref<8x128xf32, #tpu.memory_space<vmem>>, vector<8x128xf32>
      tpu.vector_store %arg7[%c0_11, %c0_12], %12 {strides = array<i32>} : memref<8x128xf32, #tpu.memory_space<vmem>>, vector<8x128xf32>,
    } else {
    }
    %c0 = arith.constant 0 : index
    %c0_1 = arith.constant 0 : index
    %3 = vector.load %arg7[%c0, %c0_1] : memref<8x128xf32, #tpu.memory_space<vmem>>, vector<8x128xf32>
    %c0_2 = arith.constant 0 : index
    %c0_3 = arith.constant 0 : index
    %4 = vector.load %arg3[%c0_2, %c0_3] : memref<8x128xf32, #tpu.memory_space<vmem>>, vector<8x128xf32>
    %c0_4 = arith.constant 0 : index
    %c0_5 = arith.constant 0 : index
    %5 = vector.load %arg4[%c0_4, %c0_5] : memref<128x128xf32, #tpu.memory_space<vmem>>, vector<128x128xf32>
    %cst = arith.constant dense<0.000000e+00> : vector<8x128xf32>
    %6 = tpu.matmul %4, %5, %cst {dimension_numbers = #tpu.dot_dimension_numbers<[1], [0], [0], [1], [0, 0, 1, 1], [], []>} : vector<8x128xf32>, vector<128x128xf32>, vector<8x128xf32> -> vector<8x128xf32>
    %7 = arith.addf %3, %6 : vector<8x128xf32>
    %c0_6 = arith.constant 0 : index
    %c0_7 = arith.constant 0 : index
    %8 = vector.load %arg7[%c0_6, %c0_7] : memref<8x128xf32, #tpu.memory_space<vmem>>, vector<8x128xf32>
    tpu.vector_store %arg7[%c0_6, %c0_7], %7 {strides = array<i32>} : memref<8x128xf32, #tpu.memory_space<vmem>>, vector<8x128xf32>,
    %c0_i32_8 = arith.constant 0 : i32
    %9 = arith.cmpi eq, %arg2, %c0_i32_8 : i32
    %10 = arith.extui %9 : i1 to i32
    %c0_i32_9 = arith.constant 0 : i32
    %11 = arith.cmpi ne, %10, %c0_i32_9 : i32
    scf.if %11 {
      %c0_10 = arith.constant 0 : index
      %c0_11 = arith.constant 0 : index
      %12 = vector.load %arg7[%c0_10, %c0_11] : memref<8x128xf32, #tpu.memory_space<vmem>>, vector<8x128xf32>
      %c0_12 = arith.constant 0 : index
      %c0_13 = arith.constant 0 : index
      %13 = vector.load %arg5[%c0_12, %c0_13] : memref<1x128xf32, #tpu.memory_space<vmem>>, vector<1x128xf32>
      %14 = vector.broadcast %13 : vector<1x128xf32> to vector<8x128xf32>
      %15 = arith.addf %12, %14 : vector<8x128xf32>
      %c0_14 = arith.constant 0 : index
      %c0_15 = arith.constant 0 : index
      %16 = vector.load %arg6[%c0_14, %c0_15] : memref<8x128xf32, #tpu.memory_space<vmem>>, vector<8x128xf32>
      tpu.vector_store %arg6[%c0_14, %c0_15], %15 {strides = array<i32>} : memref<8x128xf32, #tpu.memory_space<vmem>>, vector<8x128xf32>,
    } else {
    }
    return
  }
  func.func @transform_0(%arg0: i32, %arg1: i32, %arg2: i32) -> (i32, i32) {
    %c0_i32 = arith.constant 0 : i32
    return %arg0, %arg2 : i32, i32
  }
  func.func @transform_1(%arg0: i32, %arg1: i32, %arg2: i32) -> (i32, i32) {
    %c0_i32 = arith.constant 0 : i32
    return %arg2, %arg1 : i32, i32
  }
  func.func @transform_2(%arg0: i32, %arg1: i32, %arg2: i32) -> (i32, i32) {
    %c0_i32 = arith.constant 0 : i32
    %c0_i32_0 = arith.constant 0 : i32
    return %c0_i32, %arg1 : i32, i32
  }
  func.func @transform_3(%arg0: i32, %arg1: i32, %arg2: i32) -> (i32, i32) {
    %c0_i32 = arith.constant 0 : i32
    return %arg0, %arg1 : i32, i32
  }
}

</mosaic_0001>

<bundles_post_ra>
// kernel: batchnorm_linear.2
= control target key start
LH: loop header
LB: loop body
LE: loop exit
PB: predicated region body
PF: predicated region fallthrough
CT: control target
= control target key end

     0   :  { %s77_s0 = inlined_call_operand.vmem [shape: f32[8,128], index: 0, kind: input, shape index: {}]   ;;  %s78_s1 = inlined_call_operand.vmem [shape: f32[1,128], index: 1, kind: output, shape index: {0}]   ;;  %s79_s2 = inlined_call_operand.vmem [shape: f32[1,128], index: 2, kind: output, shape index: {1}]  }
   0x1   :  { %v16_v0 = vld [vmem:[%s77_s0] sm:$0xff] }
   0x2   :  { %v30_v1 = vrot.slane %v16_v0, 4  ;;  %v22_v2 = vmul.f32 %v16_v0, %v16_v0 }
   0x4   :  { %v31_v3 = vadd.f32 %v30_v1, %v16_v0  ;;  %v38_v4 = vrot.slane %v22_v2, 4 }
   0x6   :  { %v32_v5 = vrot.slane %v31_v3, 2  ;;  %v39_v6 = vadd.f32 %v38_v4, %v22_v2 }
   0x8   :  { %v33_v7 = vadd.f32 %v32_v5, %v31_v3  ;;  %v40_v8 = vrot.slane %v39_v6, 2 }
   0xa   :  { %v34_v9 = vrot.slane %v33_v7, 1  ;;  %v41_v10 = vadd.f32 %v40_v8, %v39_v6 }
   0xc   :  { %v35_v11 = vadd.f32 %v34_v9, %v33_v7  ;;  %v42_v12 = vrot.slane %v41_v10, 1 }
   0xe   :  { %36 = vst [vmem:[%s78_s1] sm:$0x1] %v35_v11  ;;  %v43_v13 = vadd.f32 %v42_v12, %v41_v10 }
  0x10   :  { %44 = vst [vmem:[%s79_s2] sm:$0x1] %v43_v13 }

// kernel: batchnorm_linear.3
= control target key start
LH: loop header
LB: loop body
LE: loop exit
PB: predicated region body
PF: predicated region fallthrough
CT: control target
= control target key end

     0   :  { %v215_v1 = vmov 0.0   ;;  %vm216_vm0 = vmmov 0   ;;  %s295_s0 = inlined_call_operand.vmem [shape: f32[8,128], index: 0, kind: input, shape index: {}]   ;;  %s296_s1 = inlined_call_operand.vmem [shape: f32[128,128], index: 1, kind: input, shape index: {}]   ;;  %s297_s2 = inlined_call_operand.vmem [shape: f32[1,128], index: 2, kind: input, shape index: {}]   ;;  %s298_s3 = inlined_call_operand.hbm [shape: f32[8,128], index: 3, kind: output, shape index: {}]  }
   0x1   :  { %v37_v0 = vld [vmem:[%s296_s1 + $0x78] sm:$0xff]  ;;  %155 = vmatprep.subr.mxu0 %v215_v1  ;;  %v36_v2 = vld [vmem:[%s296_s1 + $0x70] sm:$0xff]  ;;  %187 = vmatprep.mubr.msk.f32.mxu0 %vm216_vm0, %v215_v1  ;;  %v35_v3 = vld [vmem:[%s296_s1 + $0x68] sm:$0xff] }
   0x2   :  { %156 = vmatpush3.msra.mxu0 %v37_v0  ;;  %v34_v4 = vld [vmem:[%s296_s1 + $0x60] sm:$0xff] }
   0x3   :  { %157 = vmatprep.subr.mxu0 %v215_v1 }
   0x4   :  { %158 = vmatpush3.msra.mxu0 %v36_v2 }
   0x5   :  { %159 = vmatprep.subr.mxu0 %v215_v1 }
   0x6   :  { %8 = vsyncpa [#allocation4], 0  ;;  %160 = vmatpush3.msra.mxu0 %v35_v3  ;;  %v33_v5 = vld [vmem:[%s296_s1 + $0x58] sm:$0xff]  ;;  %v32_v6 = vld [vmem:[%s296_s1 + $0x50] sm:$0xff]  ;;  %s217_s21 = smov [#allocation3]  }
   0x7   :  { %161 = vmatprep.subr.mxu0 %v215_v1  ;;  %v31_v7 = vld [vmem:[%s296_s1 + $0x48] sm:$0xff]  ;;  %v30_v8 = vld [vmem:[%s296_s1 + $0x40] sm:$0xff]  ;;  %v29_v9 = vld [vmem:[%s296_s1 + $0x38] sm:$0xff]  ;;  %s129_s22 = sshll.u32 %s217_s21, 4  ;;  %s130_s22 = int_to_ptr.vmem [resolvable:$true] %s129_s22 }
   0x8   :  { %162 = vmatpush3.msra.mxu0 %v34_v4  ;;  %v28_v10 = vld [vmem:[%s296_s1 + $0x30] sm:$0xff]  ;;  %v27_v11 = vld [vmem:[%s296_s1 + $0x28] sm:$0xff]  ;;  %v26_v12 = vld [vmem:[%s296_s1 + $0x20] sm:$0xff]  ;;  %p198_p1 = scmp.lt.s32.totalorder %s130_s22, %s130_s22 }
   0x9   :  { %163 = vmatprep.subr.mxu0 %v215_v1  ;;  %v25_v13 = vld [vmem:[%s296_s1 + $0x18] sm:$0xff]  ;;  %v24_v14 = vld [vmem:[%s296_s1 + $0x10] sm:$0xff]  ;;  %v23_v15 = vld [vmem:[%s296_s1 + $0x8] sm:$0xff] }
   0xa   :  { %164 = vmatpush3.msra.mxu0 %v33_v5  ;;  %v22_v16 = vld [vmem:[%s296_s1] sm:$0xff]  ;;  %s193_s1 = scalar_lea.vmem %s130_s22, 128 }
   0xb   :  { %165 = vmatprep.subr.mxu0 %v215_v1  ;;  %v21_v17 = vld [vmem:[%s295_s0] sm:$0xff]  ;;  %p194_p0 = scmp.ne.s32.totalorder %s130_s22, %s193_s1  ;;  %p199_p2 = scmp.lt.s32.totalorder %s193_s1, %s193_s1 }
   0xc   :  { %166 = vmatpush3.msra.mxu0 %v32_v6  ;;  %v137_v18 = vld [vmem:[%s297_s2] ss:$0 sm:$0xff] }
   0xd   :  { %167 = vmatprep.subr.mxu0 %v215_v1  ;;  %p200_p3 = por %p199_p2, %p198_p1 }
   0xe   :  { %168 = vmatpush3.msra.mxu0 %v31_v7 }
   0xf   :  { %169 = vmatprep.subr.mxu0 %v215_v1  ;;  %p201_p4 = pnand %p200_p3, %p194_p0 }
  0x10   :  { %170 = vmatpush3.msra.mxu0 %v30_v8 }
  0x11   :  { %171 = vmatprep.subr.mxu0 %v215_v1 }
  0x12   :  { %172 = vmatpush3.msra.mxu0 %v29_v9 }
  0x13   :  { %173 = vmatprep.subr.mxu0 %v215_v1 }
  0x14   :  { %174 = vmatpush3.msra.mxu0 %v28_v10 }
  0x15   :  { %175 = vmatprep.subr.mxu0 %v215_v1 }
  0x16   :  { %176 = vmatpush3.msra.mxu0 %v27_v11 }
  0x17   :  { %177 = vmatprep.subr.mxu0 %v215_v1 }
  0x18   :  { %178 = vmatpush3.msra.mxu0 %v26_v12 }
  0x19   :  { %179 = vmatprep.subr.mxu0 %v215_v1 }
  0x1a   :  { %180 = vmatpush3.msra.mxu0 %v25_v13 }
  0x1b   :  { %181 = vmatprep.subr.mxu0 %v215_v1 }
  0x1c   :  { %182 = vmatpush3.msra.mxu0 %v24_v14 }
  0x1d   :  { %183 = vmatprep.subr.mxu0 %v215_v1 }
  0x1e   :  { %184 = vmatpush3.msra.mxu0 %v23_v15 }
  0x1f   :  { %185 = vmatprep.subr.mxu0 %v215_v1 }
  0x20   :  { %186 = vmatpush3.msra.mxu0 %v22_v16 }
  0x21   :  { %188 = vmatmul.mubr.f32.vlgmr.msra.gmra.mxu0 %v21_v17 }
  0xe1   :  { %v104_v19 = vpop.f32.mrf.mxu0 }
  0xe2   :  { %v121_v20 = vadd.f32 %v137_v18, %v104_v19 }
  0xe3   :  { %v189_v21 = vpop.f32.mrf.mxu0 }
  0xe4   :  { %122 = vst [vmem:[#allocation3] sm:$0xff] %v121_v20 }
  0xe5   :  { %204 = shalt.err (!%p201_p4)
}
  0xe6   :  { %132 = dma.vmem_to_hbm [thread:$0]  %s130_s22, 128, %s298_s3, [#allocation4]  }
  0xe7   :  { %213 = dma.done.wait [#allocation4], 128  }
  0xe8   :  { %214 = vsyncadd [#allocation4], 4294967168 }
  0xe9   :  { %136 = vsyncpa [#allocation4], 1 }

</bundles_post_ra>
